<compile_context>
chip_gen: v7x
topology: tpu7x:2x2x1
jax: 0.10.0
libtpu: 0.0.40
codegen_flags: <defaults>
</compile_context>

<pallas_src>
import jax
import jax.numpy as jnp
from jax.experimental import pallas as pl
from jax.experimental.pallas import tpu as pltpu

# ----- module hyper-parameters (a concrete instantiation of __init__) --------
VOCAB = 16          # input_size
EMB = 32            # embedding_size
HID = 32            # hidden_size
LAYERS = 2          # num_layers_encoder
CELL_TYPE = "GRU"   # cell_type
DROP_OUT = 0.0      # drop_out  (forward implemented with eval-mode dropout)
BI_DIR = False      # bi_directional

BATCH = 2           # logical batch
SEQ = 8             # number of single-token forward() steps fused per call

NGATE = 4           # fused gate column blocks: [r | z | n_x | n_h]
GW = NGATE * HID    # fused gate width = 128 lanes (one MXU column tile)
BP = 8              # batch padded to one full f32 sublane tile


# -------------------------- fused Pallas kernel ------------------------------
def fused_encoder_kernel(tok_ref, emb_ref, whh_ref, wih_ref, b_ref, h0_ref,
                         y_ref, h_out_ref, h_sc):
    """One grid step == one encoder time step, all GRU layers fused.

    tok_ref   : (SEQ*BP,) int32      scalar-prefetched token stream (SMEM)
    emb_ref   : (VOCAB, 1, GW) f32   precomputed layer-0 x-side gate table
                                     [E@W_ir0^T+b_ir0+b_hr0 | z | n_x | b_hn0]
    whh_ref   : (LAYERS, HID, GW) bf16   hidden-side fused weights [r|z|0|n_h]
    wih_ref   : (LAYERS-1, HID, GW) bf16 input-side fused weights [r|z|n_x|0]
    b_ref     : (LAYERS-1, 1, GW) f32    fused biases for layers >= 1
    h0_ref    : (LAYERS, BP, HID) f32    initial hidden state
    y_ref     : (1, BP, HID) f32         per-step output block (last layer h)
    h_out_ref : (LAYERS, BP, HID) f32    final hidden state (written at last step)
    h_sc      : (LAYERS, BP, HID) f32    VMEM scratch hidden carry
    """
    t = pl.program_id(0)

    @pl.when(t == 0)
    def _():
        h_sc[...] = h0_ref[...]

    # layer-0 x-side gates: gather precomputed rows for this step's tokens
    rows = [emb_ref[tok_ref[t * BP + b]] for b in range(BP)]   # each (1, GW)
    gx = jnp.concatenate(rows, axis=0)                         # (BP, GW) f32

    new_hs = []
    x = None
    for l in range(LAYERS):                                    # unrolled layers
        h_l = h_sc[l]                                          # (BP, HID) f32
        if l > 0:
            gx = (jnp.dot(x.astype(jnp.bfloat16), wih_ref[l - 1],
                          preferred_element_type=jnp.float32)
                  + b_ref[l - 1])
        g = gx + jnp.dot(h_l.astype(jnp.bfloat16), whh_ref[l],
                         preferred_element_type=jnp.float32)   # (BP, GW) f32

        # lane-aligned gate slices: [r | z | n_x | n_h] at 0/32/64/96
        r = jax.nn.sigmoid(g[:, 0 * HID:1 * HID])
        z = jax.nn.sigmoid(g[:, 1 * HID:2 * HID])
        n = jnp.tanh(g[:, 2 * HID:3 * HID] + r * g[:, 3 * HID:4 * HID])
        h_new = (1.0 - z) * n + z * h_l
        new_hs.append(h_new)
        x = h_new

    for l in range(LAYERS):
        h_sc[l] = new_hs[l]
    y_ref[...] = new_hs[-1][None]                              # (1, BP, HID)

    @pl.when(t == pl.num_programs(0) - 1)
    def _():
        h_out_ref[...] = h_sc[...]


def fused_encoder_seq(tok_flat, emb_gates3d, whh, wih, bias, hidden0):
    seq = tok_flat.shape[0] // BP
    vspec = pl.BlockSpec(memory_space=pltpu.MemorySpace.VMEM)
    return pl.pallas_call(
        fused_encoder_kernel,
        out_shape=(jax.ShapeDtypeStruct((seq, BP, HID), jnp.float32),
                   jax.ShapeDtypeStruct((LAYERS, BP, HID), jnp.float32)),
        grid_spec=pltpu.PrefetchScalarGridSpec(
            num_scalar_prefetch=1,
            grid=(seq,),
            in_specs=[vspec, vspec, vspec, vspec, vspec],
            out_specs=(
                pl.BlockSpec((1, BP, HID), lambda t, tok: (t, 0, 0)),
                pl.BlockSpec((LAYERS, BP, HID), lambda t, tok: (0, 0, 0)),
            ),
            scratch_shapes=[pltpu.VMEM((LAYERS, BP, HID), jnp.float32)],
        ),
        compiler_params=pltpu.CompilerParams(
            dimension_semantics=("arbitrary",)),
    )(tok_flat, emb_gates3d, whh, wih, bias, hidden0)


# ------------------------- parameter construction ----------------------------
def init_params(key):
    keys = jax.random.split(key, 1 + 4 * LAYERS)
    embedding = jax.random.normal(keys[0], (VOCAB, EMB), jnp.float32)
    bound = float(HID) ** -0.5

    def u(k, shape):
        return jax.random.uniform(k, shape, jnp.float32, -bound, bound)

    raw_layers = []
    for l in range(LAYERS):
        d_in = EMB if l == 0 else HID
        k = keys[1 + 4 * l: 1 + 4 * (l + 1)]
        raw_layers.append((u(k[0], (3 * HID, d_in)), u(k[1], (3 * HID, HID)),
                           u(k[2], (3 * HID,)), u(k[3], (3 * HID,))))

    def split3(a):
        return a[0:HID], a[HID:2 * HID], a[2 * HID:3 * HID]

    # layer 0: fold embedding + x-side weights + ALL layer-0 biases into a
    # precomputed (VOCAB, GW) gate table with column blocks [r | z | n_x | n_h]
    w_ih0, _, b_ih0, b_hh0 = raw_layers[0]
    w_ir0, w_iz0, w_in0 = split3(w_ih0)
    b_ir0, b_iz0, b_in0 = split3(b_ih0)
    b_hr0, b_hz0, b_hn0 = split3(b_hh0)
    emb_gates = jnp.concatenate([
        embedding @ w_ir0.T + b_ir0 + b_hr0,
        embedding @ w_iz0.T + b_iz0 + b_hz0,
        embedding @ w_in0.T + b_in0,
        jnp.broadcast_to(b_hn0, (VOCAB, HID)),
    ], axis=-1)                                               # (VOCAB, GW) f32

    # hidden-side fused weights, all layers: columns [W_hr^T | W_hz^T | 0 | W_hn^T]
    whh = jnp.stack([
        jnp.concatenate([w_hh[0:HID].T, w_hh[HID:2 * HID].T,
                         jnp.zeros((HID, HID), jnp.float32),
                         w_hh[2 * HID:3 * HID].T], axis=-1)
        for (_, w_hh, _, _) in raw_layers])                   # (LAYERS, HID, GW)

    # input-side fused weights + biases, layers >= 1: [W_ir^T | W_iz^T | W_in^T | 0]
    wih_list, b_list = [], []
    for l in range(1, LAYERS):
        w_ih, _, b_ih, b_hh = raw_layers[l]
        w_ir, w_iz, w_in = split3(w_ih)
        b_ir, b_iz, b_in_ = split3(b_ih)
        b_hr, b_hz, b_hn = split3(b_hh)
        wih_list.append(jnp.concatenate(
            [w_ir.T, w_iz.T, w_in.T, jnp.zeros((HID, HID), jnp.float32)],
            axis=-1))
        b_list.append(jnp.concatenate(
            [b_ir + b_hr, b_iz + b_hz, b_in_, b_hn])[None, :])

    return {
        "embedding": embedding,
        "raw_layers": raw_layers,                             # PyTorch-layout f32
        "emb_gates3d": emb_gates.reshape(VOCAB, 1, GW),       # f32 (tiny table)
        "whh": whh.astype(jnp.bfloat16),                      # (LAYERS, HID, GW)
        "wih": jnp.stack(wih_list).astype(jnp.bfloat16),      # (LAYERS-1, HID, GW)
        "bias": jnp.stack(b_list),                            # (LAYERS-1, 1, GW) f32
    }


# ------------------------------ forward pass ---------------------------------
def encoder_forward_seq(params, tokens, hidden):
    """Runs SEQ consecutive EncoderRNNWithAttention.forward steps (GRU,
    eval-mode dropout) in one fused pallas_call.

    tokens: (SEQ, B) int32, hidden: (LAYERS, B, HID) float32
    returns (y_cap: (SEQ, B, HID), new_hidden: (LAYERS, B, HID))
    """
    seq, b = tokens.shape
    tok = jnp.clip(tokens.astype(jnp.int32), 0, VOCAB - 1)   # bounds-safe gather
    tok_p = jnp.zeros((seq, BP), jnp.int32).at[:, :b].set(tok)
    hid_p = jnp.zeros((LAYERS, BP, HID), jnp.float32).at[:, :b, :].set(hidden)
    y_p, h_p = fused_encoder_seq(tok_p.reshape(-1), params["emb_gates3d"],
                                 params["whh"], params["wih"], params["bias"],
                                 hid_p)
    return y_p[:, :b, :], h_p[:, :b, :]


def encoder_forward(params, tokens, hidden):
    """Mirrors a single EncoderRNNWithAttention.forward call:
    tokens (1, B), hidden (LAYERS, B, HID) -> (y_cap (1, B, HID), new hidden)."""
    return encoder_forward_seq(params, tokens, hidden)


# --------------------------- pure-JAX reference -------------------------------
def encoder_forward_ref(params, tokens, hidden):
    ys = []
    for t in range(tokens.shape[0]):
        x = jnp.take(params["embedding"], tokens[t], axis=0)
        hs = []
        for l, (w_ih, w_hh, b_ih, b_hh) in enumerate(params["raw_layers"]):
            h = hidden[l]
            gi = jnp.dot(x, w_ih.T, precision=jax.lax.Precision.HIGHEST) + b_ih
            gh = jnp.dot(h, w_hh.T, precision=jax.lax.Precision.HIGHEST) + b_hh
            i_r, i_z, i_n = jnp.split(gi, 3, axis=-1)
            h_r, h_z, h_n = jnp.split(gh, 3, axis=-1)
            r = jax.nn.sigmoid(i_r + h_r)
            z = jax.nn.sigmoid(i_z + h_z)
            n = jnp.tanh(i_n + r * h_n)
            h_new = (1.0 - z) * n + z * h
            hs.append(h_new)
            x = h_new
        hidden = jnp.stack(hs, axis=0)
        ys.append(x)
    return jnp.stack(ys, axis=0), hidden


# ---------------------------------- main --------------------------------------
if __name__ == "__main__":
    key = jax.random.PRNGKey(0)
    k_param, k_tok = jax.random.split(key)

    params = init_params(k_param)
    tokens = jax.random.randint(k_tok, (SEQ, BATCH), 0, VOCAB, dtype=jnp.int32)
    # initHidden(batch_size, num_layers_enc) with bi_directional=False
    hidden0 = jnp.zeros((LAYERS, BATCH, HID), jnp.float32)

    # whole-sequence run: SEQ forward() steps fused into one pallas_call
    y_cap, hidden_new = encoder_forward_seq(params, tokens, hidden0)
    y_cap = jax.block_until_ready(y_cap)
    hidden_new = jax.block_until_ready(hidden_new)

    y_ref, h_ref = encoder_forward_ref(params, tokens, hidden0)
    assert y_cap.shape == (SEQ, BATCH, HID)
    assert hidden_new.shape == (LAYERS, BATCH, HID)
    assert jnp.allclose(y_cap, y_ref, rtol=2e-2, atol=2e-2)       # bf16 weights
    assert jnp.allclose(hidden_new, h_ref, rtol=2e-2, atol=2e-2)

    # single-step call matching the module's forward signature exactly
    y1, h1 = encoder_forward(params, tokens[:1], hidden0)
    y1 = jax.block_until_ready(y1)
    h1 = jax.block_until_ready(h1)
    y1_ref, h1_ref = encoder_forward_ref(params, tokens[:1], hidden0)
    assert y1.shape == (1, BATCH, HID)
    assert h1.shape == (LAYERS, BATCH, HID)
    assert jnp.allclose(y1, y1_ref, rtol=2e-2, atol=2e-2)
    assert jnp.allclose(h1, h1_ref, rtol=2e-2, atol=2e-2)

    print("KERNEL_OK")
</pallas_src>

<mosaic_0001>
module attributes {stable_mosaic.version = 11 : i64} {
  func.func @fused_encoder_kernel(%arg0: i32, %arg1: memref<64xi32, #tpu.memory_space<smem>>, %arg2: memref<16x1x128xf32, #tpu.memory_space<vmem>>, %arg3: memref<2x32x128xbf16, #tpu.memory_space<vmem>>, %arg4: memref<1x32x128xbf16, #tpu.memory_space<vmem>>, %arg5: memref<1x1x128xf32, #tpu.memory_space<vmem>>, %arg6: memref<2x8x32xf32, #tpu.memory_space<vmem>>, %arg7: memref<1x8x32xf32, #tpu.memory_space<vmem>>, %arg8: memref<2x8x32xf32, #tpu.memory_space<vmem>>, %arg9: memref<2x8x32xf32, #tpu.memory_space<vmem>>) attributes {dimension_semantics = [#tpu.dimension_semantics<arbitrary>], iteration_bounds = array<i64: 8>, scalar_prefetch = 1 : i64, scratch_operands = 1 : i64, tpu.core_type = #tpu.core_type<tc>, window_params = [{pipeline_mode = #tpu.pipeline_mode<synchronous>, transform_indices = @transform_0, window_bounds = array<i64: 16, 1, 128>}, {pipeline_mode = #tpu.pipeline_mode<synchronous>, transform_indices = @transform_1, window_bounds = array<i64: 2, 32, 128>}, {pipeline_mode = #tpu.pipeline_mode<synchronous>, transform_indices = @transform_2, window_bounds = array<i64: 1, 32, 128>}, {pipeline_mode = #tpu.pipeline_mode<synchronous>, transform_indices = @transform_3, window_bounds = array<i64: 1, 1, 128>}, {pipeline_mode = #tpu.pipeline_mode<synchronous>, transform_indices = @transform_4, window_bounds = array<i64: 2, 8, 32>}, {transform_indices = @transform_5, window_bounds = array<i64: 1, 8, 32>}, {pipeline_mode = #tpu.pipeline_mode<synchronous>, transform_indices = @transform_6, window_bounds = array<i64: 2, 8, 32>}]} {
    %c0_i32 = arith.constant 0 : i32
    %0 = arith.cmpi eq, %arg0, %c0_i32 : i32
    %1 = arith.extui %0 : i1 to i32
    %c0_i32_0 = arith.constant 0 : i32
    %2 = arith.cmpi ne, %1, %c0_i32_0 : i32
    scf.if %2 {
      %c0_60 = arith.constant 0 : index
      %c0_61 = arith.constant 0 : index
      %c0_62 = arith.constant 0 : index
      %137 = vector.load %arg6[%c0_60, %c0_61, %c0_62] : memref<2x8x32xf32, #tpu.memory_space<vmem>>, vector<2x8x32xf32>
      %c0_63 = arith.constant 0 : index
      %c0_64 = arith.constant 0 : index
      %c0_65 = arith.constant 0 : index
      %138 = vector.load %arg9[%c0_63, %c0_64, %c0_65] : memref<2x8x32xf32, #tpu.memory_space<vmem>>, vector<2x8x32xf32>
      tpu.vector_store %arg9[%c0_63, %c0_64, %c0_65], %137 {strides = array<i32>} : memref<2x8x32xf32, #tpu.memory_space<vmem>>, vector<2x8x32xf32>,
    } else {
    }
    %c8_i32 = arith.constant 8 : i32
    %3 = arith.muli %arg0, %c8_i32 : i32
    %c0_i32_1 = arith.constant 0 : i32
    %4 = arith.addi %3, %c0_i32_1 : i32
    %5 = arith.index_cast %4 : i32 to index
    %6 = memref.load %arg1[%5] : memref<64xi32, #tpu.memory_space<smem>>
    %7 = arith.index_cast %6 : i32 to index
    %c0 = arith.constant 0 : index
    %c0_2 = arith.constant 0 : index
    %8 = vector.load %arg2[%7, %c0, %c0_2] : memref<16x1x128xf32, #tpu.memory_space<vmem>>, vector<1x1x128xf32>
    %9 = vector.shape_cast %8 : vector<1x1x128xf32> to vector<1x128xf32>
    %c8_i32_3 = arith.constant 8 : i32
    %10 = arith.muli %arg0, %c8_i32_3 : i32
    %c1_i32 = arith.constant 1 : i32
    %11 = arith.addi %10, %c1_i32 : i32
    %12 = arith.index_cast %11 : i32 to index
    %13 = memref.load %arg1[%12] : memref<64xi32, #tpu.memory_space<smem>>
    %14 = arith.index_cast %13 : i32 to index
    %c0_4 = arith.constant 0 : index
    %c0_5 = arith.constant 0 : index
    %15 = vector.load %arg2[%14, %c0_4, %c0_5] : memref<16x1x128xf32, #tpu.memory_space<vmem>>, vector<1x1x128xf32>
    %16 = vector.shape_cast %15 : vector<1x1x128xf32> to vector<1x128xf32>
    %c8_i32_6 = arith.constant 8 : i32
    %17 = arith.muli %arg0, %c8_i32_6 : i32
    %c2_i32 = arith.constant 2 : i32
    %18 = arith.addi %17, %c2_i32 : i32
    %19 = arith.index_cast %18 : i32 to index
    %20 = memref.load %arg1[%19] : memref<64xi32, #tpu.memory_space<smem>>
    %21 = arith.index_cast %20 : i32 to index
    %c0_7 = arith.constant 0 : index
    %c0_8 = arith.constant 0 : index
    %22 = vector.load %arg2[%21, %c0_7, %c0_8] : memref<16x1x128xf32, #tpu.memory_space<vmem>>, vector<1x1x128xf32>
    %23 = vector.shape_cast %22 : vector<1x1x128xf32> to vector<1x128xf32>
    %c8_i32_9 = arith.constant 8 : i32
    %24 = arith.muli %arg0, %c8_i32_9 : i32
    %c3_i32 = arith.constant 3 : i32
    %25 = arith.addi %24, %c3_i32 : i32
    %26 = arith.index_cast %25 : i32 to index
    %27 = memref.load %arg1[%26] : memref<64xi32, #tpu.memory_space<smem>>
    %28 = arith.index_cast %27 : i32 to index
    %c0_10 = arith.constant 0 : index
    %c0_11 = arith.constant 0 : index
    %29 = vector.load %arg2[%28, %c0_10, %c0_11] : memref<16x1x128xf32, #tpu.memory_space<vmem>>, vector<1x1x128xf32>
    %30 = vector.shape_cast %29 : vector<1x1x128xf32> to vector<1x128xf32>
    %c8_i32_12 = arith.constant 8 : i32
    %31 = arith.muli %arg0, %c8_i32_12 : i32
    %c4_i32 = arith.constant 4 : i32
    %32 = arith.addi %31, %c4_i32 : i32
    %33 = arith.index_cast %32 : i32 to index
    %34 = memref.load %arg1[%33] : memref<64xi32, #tpu.memory_space<smem>>
    %35 = arith.index_cast %34 : i32 to index
    %c0_13 = arith.constant 0 : index
    %c0_14 = arith.constant 0 : index
    %36 = vector.load %arg2[%35, %c0_13, %c0_14] : memref<16x1x128xf32, #tpu.memory_space<vmem>>, vector<1x1x128xf32>
    %37 = vector.shape_cast %36 : vector<1x1x128xf32> to vector<1x128xf32>
    %c8_i32_15 = arith.constant 8 : i32
    %38 = arith.muli %arg0, %c8_i32_15 : i32
    %c5_i32 = arith.constant 5 : i32
    %39 = arith.addi %38, %c5_i32 : i32
    %40 = arith.index_cast %39 : i32 to index
    %41 = memref.load %arg1[%40] : memref<64xi32, #tpu.memory_space<smem>>
    %42 = arith.index_cast %41 : i32 to index
    %c0_16 = arith.constant 0 : index
    %c0_17 = arith.constant 0 : index
    %43 = vector.load %arg2[%42, %c0_16, %c0_17] : memref<16x1x128xf32, #tpu.memory_space<vmem>>, vector<1x1x128xf32>
    %44 = vector.shape_cast %43 : vector<1x1x128xf32> to vector<1x128xf32>
    %c8_i32_18 = arith.constant 8 : i32
    %45 = arith.muli %arg0, %c8_i32_18 : i32
    %c6_i32 = arith.constant 6 : i32
    %46 = arith.addi %45, %c6_i32 : i32
    %47 = arith.index_cast %46 : i32 to index
    %48 = memref.load %arg1[%47] : memref<64xi32, #tpu.memory_space<smem>>
    %49 = arith.index_cast %48 : i32 to index
    %c0_19 = arith.constant 0 : index
    %c0_20 = arith.constant 0 : index
    %50 = vector.load %arg2[%49, %c0_19, %c0_20] : memref<16x1x128xf32, #tpu.memory_space<vmem>>, vector<1x1x128xf32>
    %51 = vector.shape_cast %50 : vector<1x1x128xf32> to vector<1x128xf32>
    %c8_i32_21 = arith.constant 8 : i32
    %52 = arith.muli %arg0, %c8_i32_21 : i32
    %c7_i32 = arith.constant 7 : i32
    %53 = arith.addi %52, %c7_i32 : i32
    %54 = arith.index_cast %53 : i32 to index
    %55 = memref.load %arg1[%54] : memref<64xi32, #tpu.memory_space<smem>>
    %56 = arith.index_cast %55 : i32 to index
    %c0_22 = arith.constant 0 : index
    %c0_23 = arith.constant 0 : index
    %57 = vector.load %arg2[%56, %c0_22, %c0_23] : memref<16x1x128xf32, #tpu.memory_space<vmem>>, vector<1x1x128xf32>
    %58 = vector.shape_cast %57 : vector<1x1x128xf32> to vector<1x128xf32>
    %59 = tpu.concatenate %9, %16, %23, %30, %37, %44, %51, %58 in 0 : vector<1x128xf32>, vector<1x128xf32>, vector<1x128xf32>, vector<1x128xf32>, vector<1x128xf32>, vector<1x128xf32>, vector<1x128xf32>, vector<1x128xf32> -> vector<8x128xf32>
    %c0_24 = arith.constant 0 : index
    %c0_25 = arith.constant 0 : index
    %c0_26 = arith.constant 0 : index
    %60 = vector.load %arg9[%c0_24, %c0_25, %c0_26] : memref<2x8x32xf32, #tpu.memory_space<vmem>>, vector<1x8x32xf32>
    %61 = vector.shape_cast %60 : vector<1x8x32xf32> to vector<8x32xf32>
    %62 = arith.truncf %61 : vector<8x32xf32> to vector<8x32xbf16>
    %c0_27 = arith.constant 0 : index
    %c0_28 = arith.constant 0 : index
    %c0_29 = arith.constant 0 : index
    %63 = vector.load %arg3[%c0_27, %c0_28, %c0_29] : memref<2x32x128xbf16, #tpu.memory_space<vmem>>, vector<1x32x128xbf16>
    %64 = vector.shape_cast %63 : vector<1x32x128xbf16> to vector<32x128xbf16>
    %cst = arith.constant dense<0.000000e+00> : vector<8x128xf32>
    %65 = tpu.matmul %62, %64, %cst {dimension_numbers = #tpu.dot_dimension_numbers<[1], [0], [0], [1], [0, 0, 1, 1], [], []>} : vector<8x32xbf16>, vector<32x128xbf16>, vector<8x128xf32> -> vector<8x128xf32>
    %66 = arith.addf %59, %65 : vector<8x128xf32>
    %67 = vector.extract_strided_slice %66 {offsets = [0, 0], sizes = [8, 32], strides = [1, 1]} : vector<8x128xf32> to vector<8x32xf32>
    %68 = arith.negf %67 : vector<8x32xf32>
    %69 = math.exp %68 : vector<8x32xf32>
    %cst_30 = arith.constant 1.000000e+00 : f32
    %70 = vector.broadcast %cst_30 : f32 to vector<8x32xf32>
    %71 = arith.addf %70, %69 : vector<8x32xf32>
    %72 = arith.divf %70, %71 : vector<8x32xf32>
    %73 = vector.extract_strided_slice %66 {offsets = [0, 32], sizes = [8, 32], strides = [1, 1]} : vector<8x128xf32> to vector<8x32xf32>
    %74 = arith.negf %73 : vector<8x32xf32>
    %75 = math.exp %74 : vector<8x32xf32>
    %cst_31 = arith.constant 1.000000e+00 : f32
    %76 = vector.broadcast %cst_31 : f32 to vector<8x32xf32>
    %77 = arith.addf %76, %75 : vector<8x32xf32>
    %78 = arith.divf %76, %77 : vector<8x32xf32>
    %79 = vector.extract_strided_slice %66 {offsets = [0, 64], sizes = [8, 32], strides = [1, 1]} : vector<8x128xf32> to vector<8x32xf32>
    %80 = vector.extract_strided_slice %66 {offsets = [0, 96], sizes = [8, 32], strides = [1, 1]} : vector<8x128xf32> to vector<8x32xf32>
    %81 = arith.mulf %72, %80 : vector<8x32xf32>
    %82 = arith.addf %79, %81 : vector<8x32xf32>
    %83 = math.tanh %82 : vector<8x32xf32>
    %cst_32 = arith.constant 1.000000e+00 : f32
    %84 = vector.broadcast %cst_32 : f32 to vector<8x32xf32>
    %85 = arith.subf %84, %78 : vector<8x32xf32>
    %86 = arith.mulf %85, %83 : vector<8x32xf32>
    %87 = arith.mulf %78, %61 : vector<8x32xf32>
    %88 = arith.addf %86, %87 : vector<8x32xf32>
    %c1 = arith.constant 1 : index
    %c0_33 = arith.constant 0 : index
    %c0_34 = arith.constant 0 : index
    %89 = vector.load %arg9[%c1, %c0_33, %c0_34] : memref<2x8x32xf32, #tpu.memory_space<vmem>>, vector<1x8x32xf32>
    %90 = vector.shape_cast %89 : vector<1x8x32xf32> to vector<8x32xf32>
    %91 = arith.truncf %88 : vector<8x32xf32> to vector<8x32xbf16>
    %c0_35 = arith.constant 0 : index
    %c0_36 = arith.constant 0 : index
    %c0_37 = arith.constant 0 : index
    %92 = vector.load %arg4[%c0_35, %c0_36, %c0_37] : memref<1x32x128xbf16, #tpu.memory_space<vmem>>, vector<1x32x128xbf16>
    %93 = vector.shape_cast %92 : vector<1x32x128xbf16> to vector<32x128xbf16>
    %cst_38 = arith.constant dense<0.000000e+00> : vector<8x128xf32>
    %94 = tpu.matmul %91, %93, %cst_38 {dimension_numbers = #tpu.dot_dimension_numbers<[1], [0], [0], [1], [0, 0, 1, 1], [], []>} : vector<8x32xbf16>, vector<32x128xbf16>, vector<8x128xf32> -> vector<8x128xf32>
    %c0_39 = arith.constant 0 : index
    %c0_40 = arith.constant 0 : index
    %c0_41 = arith.constant 0 : index
    %95 = vector.load %arg5[%c0_39, %c0_40, %c0_41] : memref<1x1x128xf32, #tpu.memory_space<vmem>>, vector<1x1x128xf32>
    %96 = vector.shape_cast %95 : vector<1x1x128xf32> to vector<1x128xf32>
    %97 = vector.broadcast %96 : vector<1x128xf32> to vector<8x128xf32>
    %98 = arith.addf %94, %97 : vector<8x128xf32>
    %99 = arith.truncf %90 : vector<8x32xf32> to vector<8x32xbf16>
    %c1_42 = arith.constant 1 : index
    %c0_43 = arith.constant 0 : index
    %c0_44 = arith.constant 0 : index
    %100 = vector.load %arg3[%c1_42, %c0_43, %c0_44] : memref<2x32x128xbf16, #tpu.memory_space<vmem>>, vector<1x32x128xbf16>
    %101 = vector.shape_cast %100 : vector<1x32x128xbf16> to vector<32x128xbf16>
    %cst_45 = arith.constant dense<0.000000e+00> : vector<8x128xf32>
    %102 = tpu.matmul %99, %101, %cst_45 {dimension_numbers = #tpu.dot_dimension_numbers<[1], [0], [0], [1], [0, 0, 1, 1], [], []>} : vector<8x32xbf16>, vector<32x128xbf16>, vector<8x128xf32> -> vector<8x128xf32>
    %103 = arith.addf %98, %102 : vector<8x128xf32>
    %104 = vector.extract_strided_slice %103 {offsets = [0, 0], sizes = [8, 32], strides = [1, 1]} : vector<8x128xf32> to vector<8x32xf32>
    %105 = arith.negf %104 : vector<8x32xf32>
    %106 = math.exp %105 : vector<8x32xf32>
    %cst_46 = arith.constant 1.000000e+00 : f32
    %107 = vector.broadcast %cst_46 : f32 to vector<8x32xf32>
    %108 = arith.addf %107, %106 : vector<8x32xf32>
    %109 = arith.divf %107, %108 : vector<8x32xf32>
    %110 = vector.extract_strided_slice %103 {offsets = [0, 32], sizes = [8, 32], strides = [1, 1]} : vector<8x128xf32> to vector<8x32xf32>
    %111 = arith.negf %110 : vector<8x32xf32>
    %112 = math.exp %111 : vector<8x32xf32>
    %cst_47 = arith.constant 1.000000e+00 : f32
    %113 = vector.broadcast %cst_47 : f32 to vector<8x32xf32>
    %114 = arith.addf %113, %112 : vector<8x32xf32>
    %115 = arith.divf %113, %114 : vector<8x32xf32>
    %116 = vector.extract_strided_slice %103 {offsets = [0, 64], sizes = [8, 32], strides = [1, 1]} : vector<8x128xf32> to vector<8x32xf32>
    %117 = vector.extract_strided_slice %103 {offsets = [0, 96], sizes = [8, 32], strides = [1, 1]} : vector<8x128xf32> to vector<8x32xf32>
    %118 = arith.mulf %109, %117 : vector<8x32xf32>
    %119 = arith.addf %116, %118 : vector<8x32xf32>
    %120 = math.tanh %119 : vector<8x32xf32>
    %cst_48 = arith.constant 1.000000e+00 : f32
    %121 = vector.broadcast %cst_48 : f32 to vector<8x32xf32>
    %122 = arith.subf %121, %115 : vector<8x32xf32>
    %123 = arith.mulf %122, %120 : vector<8x32xf32>
    %124 = arith.mulf %115, %90 : vector<8x32xf32>
    %125 = arith.addf %123, %124 : vector<8x32xf32>
    %c0_49 = arith.constant 0 : index
    %c0_50 = arith.constant 0 : index
    %c0_51 = arith.constant 0 : index
    %126 = vector.load %arg9[%c0_49, %c0_50, %c0_51] : memref<2x8x32xf32, #tpu.memory_space<vmem>>, vector<1x8x32xf32>
    %127 = vector.shape_cast %126 : vector<1x8x32xf32> to vector<8x32xf32>
    %128 = vector.shape_cast %88 : vector<8x32xf32> to vector<1x8x32xf32>
    tpu.vector_store %arg9[%c0_49, %c0_50, %c0_51], %128 {strides = array<i32>} : memref<2x8x32xf32, #tpu.memory_space<vmem>>, vector<1x8x32xf32>,
    %c1_52 = arith.constant 1 : index
    %c0_53 = arith.constant 0 : index
    %c0_54 = arith.constant 0 : index
    %129 = vector.load %arg9[%c1_52, %c0_53, %c0_54] : memref<2x8x32xf32, #tpu.memory_space<vmem>>, vector<1x8x32xf32>
    %130 = vector.shape_cast %129 : vector<1x8x32xf32> to vector<8x32xf32>
    %131 = vector.shape_cast %125 : vector<8x32xf32> to vector<1x8x32xf32>
    tpu.vector_store %arg9[%c1_52, %c0_53, %c0_54], %131 {strides = array<i32>} : memref<2x8x32xf32, #tpu.memory_space<vmem>>, vector<1x8x32xf32>,
    %132 = vector.shape_cast %125 : vector<8x32xf32> to vector<1x8x32xf32>
    %c0_55 = arith.constant 0 : index
    %c0_56 = arith.constant 0 : index
    %c0_57 = arith.constant 0 : index
    %133 = vector.load %arg7[%c0_55, %c0_56, %c0_57] : memref<1x8x32xf32, #tpu.memory_space<vmem>>, vector<1x8x32xf32>
    tpu.vector_store %arg7[%c0_55, %c0_56, %c0_57], %132 {strides = array<i32>} : memref<1x8x32xf32, #tpu.memory_space<vmem>>, vector<1x8x32xf32>,
    %c7_i32_58 = arith.constant 7 : i32
    %134 = arith.cmpi eq, %arg0, %c7_i32_58 : i32
    %135 = arith.extui %134 : i1 to i32
    %c0_i32_59 = arith.constant 0 : i32
    %136 = arith.cmpi ne, %135, %c0_i32_59 : i32
    scf.if %136 {
      %c0_60 = arith.constant 0 : index
      %c0_61 = arith.constant 0 : index
      %c0_62 = arith.constant 0 : index
      %137 = vector.load %arg9[%c0_60, %c0_61, %c0_62] : memref<2x8x32xf32, #tpu.memory_space<vmem>>, vector<2x8x32xf32>
      %c0_63 = arith.constant 0 : index
      %c0_64 = arith.constant 0 : index
      %c0_65 = arith.constant 0 : index
      %138 = vector.load %arg8[%c0_63, %c0_64, %c0_65] : memref<2x8x32xf32, #tpu.memory_space<vmem>>, vector<2x8x32xf32>
      tpu.vector_store %arg8[%c0_63, %c0_64, %c0_65], %137 {strides = array<i32>} : memref<2x8x32xf32, #tpu.memory_space<vmem>>, vector<2x8x32xf32>,
    } else {
    }
    return
  }
  func.func @transform_0(%arg0: i32, %arg1: memref<64xi32, #tpu.memory_space<smem>>) -> (i32, i32, i32) {
    %c0_i32 = arith.constant 0 : i32
    %c0_i32_0 = arith.constant 0 : i32
    %c0_i32_1 = arith.constant 0 : i32
    %c0_i32_2 = arith.constant 0 : i32
    return %c0_i32, %c0_i32_0, %c0_i32_1 : i32, i32, i32
  }
  func.func @transform_1(%arg0: i32, %arg1: memref<64xi32, #tpu.memory_space<smem>>) -> (i32, i32, i32) {
    %c0_i32 = arith.constant 0 : i32
    %c0_i32_0 = arith.constant 0 : i32
    %c0_i32_1 = arith.constant 0 : i32
    %c0_i32_2 = arith.constant 0 : i32
    return %c0_i32, %c0_i32_0, %c0_i32_1 : i32, i32, i32
  }
  func.func @transform_2(%arg0: i32, %arg1: memref<64xi32, #tpu.memory_space<smem>>) -> (i32, i32, i32) {
    %c0_i32 = arith.constant 0 : i32
    %c0_i32_0 = arith.constant 0 : i32
    %c0_i32_1 = arith.constant 0 : i32
    %c0_i32_2 = arith.constant 0 : i32
    return %c0_i32, %c0_i32_0, %c0_i32_1 : i32, i32, i32
  }
  func.func @transform_3(%arg0: i32, %arg1: memref<64xi32, #tpu.memory_space<smem>>) -> (i32, i32, i32) {
    %c0_i32 = arith.constant 0 : i32
    %c0_i32_0 = arith.constant 0 : i32
    %c0_i32_1 = arith.constant 0 : i32
    %c0_i32_2 = arith.constant 0 : i32
    return %c0_i32, %c0_i32_0, %c0_i32_1 : i32, i32, i32
  }
  func.func @transform_4(%arg0: i32, %arg1: memref<64xi32, #tpu.memory_space<smem>>) -> (i32, i32, i32) {
    %c0_i32 = arith.constant 0 : i32
    %c0_i32_0 = arith.constant 0 : i32
    %c0_i32_1 = arith.constant 0 : i32
    %c0_i32_2 = arith.constant 0 : i32
    return %c0_i32, %c0_i32_0, %c0_i32_1 : i32, i32, i32
  }
  func.func @transform_5(%arg0: i32, %arg1: memref<64xi32, #tpu.memory_space<smem>>) -> (i32, i32, i32) {
    %c0_i32 = arith.constant 0 : i32
    %c0_i32_0 = arith.constant 0 : i32
    %c0_i32_1 = arith.constant 0 : i32
    return %arg0, %c0_i32, %c0_i32_0 : i32, i32, i32
  }
  func.func @transform_6(%arg0: i32, %arg1: memref<64xi32, #tpu.memory_space<smem>>) -> (i32, i32, i32) {
    %c0_i32 = arith.constant 0 : i32
    %c0_i32_0 = arith.constant 0 : i32
    %c0_i32_1 = arith.constant 0 : i32
    %c0_i32_2 = arith.constant 0 : i32
    return %c0_i32, %c0_i32_0, %c0_i32_1 : i32, i32, i32
  }
}

</mosaic_0001>

<bundles_post_ra>
// kernel: tpu_custom_call.1
= control target key start
LH: loop header
LB: loop body
LE: loop exit
PB: predicated region body
PF: predicated region fallthrough
CT: control target
= control target key end

     0   :  { %s1494_s0 = inlined_call_operand.hbm [shape: s32[64], index: 0, kind: input, shape index: {}]   ;;  %s1495_s1 = inlined_call_operand.hbm [shape: f32[16,1,128], index: 1, kind: input, shape index: {}]   ;;  %s1496_s2 = inlined_call_operand.hbm [shape: bf16[2,32,128], index: 2, kind: input, shape index: {}]   ;;  %s1497_s3 = inlined_call_operand.hbm [shape: bf16[1,32,128], index: 3, kind: input, shape index: {}]   ;;  %s1498_s4 = inlined_call_operand.vmem [shape: f32[1,1,128], index: 4, kind: input, shape index: {}]   ;;  %s1499_s5 = inlined_call_operand.vmem [shape: f32[2,8,32], index: 5, kind: input, shape index: {}]   ;;  %s1500_s6 = inlined_call_operand.hbm [shape: f32[8,8,32], index: 6, kind: output, shape index: {0}]   ;;  %s1501_s7 = inlined_call_operand.hbm [shape: f32[2,8,32], index: 7, kind: output, shape index: {1}]  }
   0x1   :  { %1509 = sst [smem:[#allocation20_spill]] %s1495_s1  ;;  %s957_s26 = scalar_lea.hbm %s1494_s0, 16 }
   0x2   :  { %1510 = sst [smem:[#allocation21_spill]] %s1496_s2  ;;  %p958_p0 = scmp.ne.s32.totalorder %s1494_s0, %s957_s26 }
   0x3   :  { %1511 = sst [smem:[#allocation22_spill]] %s1497_s3  ;;  %p961_p1 = scmp.lt.u32.totalorder %s957_s26, %s1494_s0 }
   0x5   :  { %p963_p2 = pnand %p961_p1, %p958_p0 }
   0x7   :  { %966 = shalt.err (!%p963_p2)  }
   0x8   :  { %s1155_s8 = smov [#allocation4]  }
   0x9   :  { %14 = dma.hbm_to_smem %s1494_s0, 16, %s1155_s8, [#allocation3] }
   0xa   :  { %1121 = dma.done.wait [#allocation3], 16 }
   0xb   :  { %1122 = vsyncadd [#allocation3], 4294967280 }
   0xc   :  { %16 = sfence }
   0xd   :  { %17 = vsyncpa [#allocation6], 0 }
   0xe   :  { %18 = vsyncpa [#allocation9], 0 }
   0xf   :  { %19 = vsyncpa [#allocation7], 0 }
  0x10   :  { %21 = vsyncpa [#allocation7 + $0x1], 0 }
  0x11   :  { %22 = vsyncpa [#allocation13], 0  ;;  %s1224_s11 = smov 0   ;;  %s1226_s12 = smov 0  }
  0x12   :  { %s1228_s13 = smov 0   ;;  %s1230_s14 = smov 0  }
  0x13 LB: > { %s1245_s0 = sadd.s32 4294967295, %s1153_s14   ;;  %s774_s15 = sadd.s32 4294967294, %s1153_s14   ;;  %s1153_s14 = sphi %s1230_s14, %s1543_s14   ;;  %s1149_s13 = sphi %s1228_s13, %s1542_s13   ;;  %s1145_s12 = sphi %s1226_s12, %s1541_s12   ;;  %s1141_s11 = sphi %s1224_s11, %s1540_s11  }
  0x14   : > { %s1249_s16 = sadd.s32 1, %s1153_s14   ;;  %s140_s17 = sadd.s32 1, %s1149_s13 }
  0x15   : > { %s137_s18 = ssub.s32 %s1153_s14, %s1249_s16  ;;  %p150_p3 = scmp.ne.s32.totalorder %s1149_s13, %s1145_s12 }
  0x16   : > { %p138_p4 = scmp.eq.s32.totalorder %s137_s18, 0  ;;  %p1502_p5 = scmp.eq.s32.totalorder %s1245_s0, 7 }
  0x17   : > { %p156_p6 = scmp.ne.s32.totalorder %s1145_s12, %s1141_s11  ;;  %p157_p7 = scmp.eq.s32.totalorder %s774_s15, 7 }
  0x18   : > { %s1260_s19 = scalar_select %p138_p4, %s1149_s13, %s140_s17  }
  0x19   : > { %p1264_p8 = por %p1502_p5, %p150_p3  ;;  %p1268_p9 = por %p157_p7, %p156_p6 }
  0x1a   : > { %1512 = sst [smem:[#allocation19_spill]] %s1260_s19  ;;  %p775_p10 = scmp.ge.s32.totalorder %s1153_s14, 1 }
  0x1b   : > { %s1513_s20 = scalar_select %p1264_p8, 1, 0 }
  0x1c   : > { %s1514_s21 = scalar_select %p1268_p9, 1, 0 }
  0x1d   : > { %p185_p11 = scmp.lt.s32.totalorder %s1153_s14, 9  ;;  %p1503_p13 = scmp.eq.s32.totalorder %s1245_s0, 0 }
  0x1e   : > { %s1156_s23 = smov [#allocation8]   ;;  %s1157_s26 = smov [#allocation5]  }
  0x1f   : > { %p1276_p0 = pnand %p775_p10, %p185_p11  ;;  %s210_s24 = sshll.u32 %s1156_s23, 4  ;;  %s211_s24 = int_to_ptr.vmem [resolvable:$true] %s210_s24 }
  0x20   : > { %s197_s27 = sshll.u32 %s1157_s26, 4  ;;  %s1517_s2 = sld [smem:[#allocation21_spill]]  ;;  %s1288_s27 = int_to_ptr.vmem [resolvable:$true] %s197_s27 }
  0x21   : > { %s1515_s22 = scalar_select %p1276_p0, 1, 0 }
  0x22   : > { %p868_p1 = pneg %p1276_p0 }
  0x24   : > { %p1284_p2 = pnand %p1503_p13, %p868_p1 }
  0x26   : > { %s967_s30 = scalar_lea.hbm %s1517_s2, 512  ;;  %p1298_p4 = pneg %p1284_p2 }
  0x27   : > { %p968_p3 = scmp.ne.s32.totalorder %s1517_s2, %s967_s30  ;;  %p974_p10 = scmp.lt.u32.totalorder %s967_s30, %s1517_s2 }
  0x29   : > { %p970_p6 = pnand %p1298_p4, %p968_p3 }
  0x2b   : > { %p971_p7 = pneg %p970_p6 }
  0x2d   : > { %p976_p11 = pnand %p974_p10, %p971_p7 }
  0x2f   : > { %979 = shalt.err (!%p976_p11)
}
  0x30   : > { %s980_s18 = scalar_lea.vmem %s211_s24, 512  ;;  %p988_p13 = scmp.lt.s32.totalorder %s211_s24, %s211_s24 }
  0x31   : > { %p981_p1 = scmp.ne.s32.totalorder %s211_s24, %s980_s18  ;;  %p989_p9 = scmp.lt.s32.totalorder %s980_s18, %s980_s18 }
  0x33   : > { %p983_p5 = pnand %p981_p1, %p1298_p4  ;;  %p990_p8 = por %p989_p9, %p988_p13 }
  0x35   : > { %p984_p12 = pneg %p983_p5 }
  0x37   : > { %p991_p0 = pnand %p990_p8, %p984_p12 }
  0x39   : > { %994 = shalt.err (!%p991_p0)
}
  0x3a   : > { %s1506_s23 = smov 64   ;;  %s1507_s26 = smov 4  }
  0x3b   : > { %874 = dma.hbm_to_vmem [thread:$0]  (!%p1284_p2), %s1517_s2, 512, %s211_s24, [#allocation9], %s1506_s23, %s1506_s23, %s1507_s26  }
  0x3c   : > { %s1519_s1 = sld [smem:[#allocation20_spill]] }
  0x42   : > { %s995_s9 = scalar_lea.hbm %s1519_s1, 256 }
  0x43   : > { %p996_p5 = scmp.ne.s32.totalorder %s1519_s1, %s995_s9  ;;  %p1002_p12 = scmp.lt.u32.totalorder %s995_s9, %s1519_s1 }
  0x45   : > { %p998_p8 = pnand %p996_p5, %p1298_p4 }
  0x47   : > { %p999_p9 = pneg %p998_p8 }
  0x49   : > { %p1004_p13 = pnand %p1002_p12, %p999_p9 }
  0x4b   : > { %1007 = shalt.err (!%p1004_p13)
}
  0x4c   : > { %s1008_s24 = scalar_lea.vmem %s1288_s27, 256  ;;  %p1016_p7 = scmp.lt.s32.totalorder %s1288_s27, %s1288_s27 }
  0x4d   : > { %p1009_p0 = scmp.ne.s32.totalorder %s1288_s27, %s1008_s24  ;;  %p1017_p10 = scmp.lt.s32.totalorder %s1008_s24, %s1008_s24 }
  0x4f   : > { %p1011_p3 = pnand %p1009_p0, %p1298_p4  ;;  %p1018_p11 = por %p1017_p10, %p1016_p7 }
  0x51   : > { %p1012_p6 = pneg %p1011_p3 }
  0x53   : > { %p1019_p1 = pnand %p1018_p11, %p1012_p6 }
  0x55   : > { %1022 = shalt.err (!%p1019_p1)
}
  0x56   : > { %s1160_s28 = smov 16   ;;  %s1161_s19 = smov 1  }
  0x57   : > { %871 = dma.hbm_to_vmem [thread:$0]  (!%p1284_p2), %s1519_s1, 256, %s1288_s27, [#allocation6], %s1160_s28, %s1160_s28, %s1161_s19  }
  0x58   : > { %s1162_s8 = smov [#allocation10]   ;;  %s1520_s3 = sld [smem:[#allocation22_spill]] }
  0x59   : > { %s223_s9 = sshll.u32 %s1162_s8, 4  ;;  %s224_s9 = int_to_ptr.vmem [resolvable:$true] %s223_s9 }
  0x5e   : > { %s1023_s18 = scalar_lea.hbm %s1520_s3, 256 }
  0x5f   : > { %p1024_p5 = scmp.ne.s32.totalorder %s1520_s3, %s1023_s18  ;;  %p1030_p12 = scmp.lt.u32.totalorder %s1023_s18, %s1520_s3 }
  0x61   : > { %p1026_p8 = pnand %p1024_p5, %p1298_p4 }
  0x63   : > { %p1027_p9 = pneg %p1026_p8 }
  0x65   : > { %p1032_p13 = pnand %p1030_p12, %p1027_p9 }
  0x67   : > { %1035 = shalt.err (!%p1032_p13)
}
  0x68   : > { %s1036_s27 = scalar_lea.vmem %s224_s9, 256  ;;  %p1044_p7 = scmp.lt.s32.totalorder %s224_s9, %s224_s9 }
  0x69   : > { %p1037_p0 = scmp.ne.s32.totalorder %s224_s9, %s1036_s27  ;;  %p1045_p10 = scmp.lt.s32.totalorder %s1036_s27, %s1036_s27 }
  0x6b   : > { %p1039_p3 = pnand %p1037_p0, %p1298_p4  ;;  %p1046_p11 = por %p1045_p10, %p1044_p7 }
  0x6d   : > { %p1040_p6 = pneg %p1039_p3 }
  0x6f   : > { %p1047_p1 = pnand %p1046_p11, %p1040_p6 }
  0x71   : > { %1050 = shalt.err (!%p1047_p1)
}
  0x72   : > { %s1521_s23 = smov 4   ;;  %s1522_s28 = smov 64  }
  0x73   : > { %877 = dma.hbm_to_vmem [thread:$0]  (!%p1284_p2), %s1520_s3, 256, %s224_s9, [#allocation9], %s1522_s28, %s1522_s28, %s1521_s23  }
  0x74   : > { %p1523_p5 = scmp.ne.s32.totalorder %s1515_s22, 0 }
  0x75   : > { %p1524_p4 = scmp.eq.s32.totalorder (!%p1523_p5), %s1245_s0, 0 }
  0x76   : > { %245 = sbr.rel (%p1523_p5) target bundleno = 1615 (0x64f), region = 40 }
  0x7d   : > { %1124 = dma.done.wait (%p1524_p4), [#allocation6], 256   ;;  %p1525_p8 = pmov %p1524_p4 }
  0x7e   : > { %p1526_p9 = pmov %p1524_p4 }
  0x7f   : > { %1126 = vsyncadd (%p1525_p8), [#allocation6], 4294967040 }
  0x80   : > { %1128 = dma.done.wait (%p1526_p9), [#allocation9], 768   ;;  %p1527_p12 = pmov %p1524_p4 }
  0x81   : > { %s1508_s25 = sand.u32 1, %s1145_s12   ;;  %p1528_p2 = scmp.ne.s32.totalorder %s1245_s0, 0 }
  0x82   : > { %1130 = vsyncadd (%p1527_p12), [#allocation9], 4294966528  ;;  %s1374_s10 = sshll.u32 %s1508_s25, 3  ;;  %v283_v0 = vld [vmem:[%s1499_s5] sm:$0xff] (!%p1528_p2)  ;;  %vm285_vm0 = vcmask (!%p1528_p2), 261120   ;;  %v284_v1 = vld [vmem:[%s1499_s5 + $0x8] sm:$0xff] (!%p1528_p2) }
  0x83   : > { %282 = sbr.rel (%p1528_p2) target bundleno = 138 (0x8a), region = 56  ;;  %286 = vst.msk [vmem:[#allocation2] sm:$0xff] (!%p1528_p2), %vm285_vm0, %v283_v0  ;;  %287 = vst.msk [vmem:[#allocation2 + $0x8] sm:$0xff] (!%p1528_p2), %vm285_vm0, %v284_v1 }
  0x8a PF: > { %v939_v2 = vld [vmem:[#allocation8] sm:$0xff]   ;;  %v1163_v3 = vmov 0.0   ;;  %v940_v4 = vld [vmem:[#allocation8 + $0x8] sm:$0xff]   ;;  %vm1164_vm1 = vmmov 0   ;;  %vm394_vm2 = vcmask 261120   ;;  %s785_s9 = sshll.u32 %s1245_s0, 3 }
  0x8b   : > { %821 = vmatprep.subr.bf16.mxu0 %v1163_v3  ;;  %829 = vmatprep.subr.bf16.mxu1 %v1163_v3  ;;  %v1389_v5 = vld [vmem:[#allocation2] sm:$0xff]  ;;  %s292_s15 = sadd.s32 1, %s785_s9  ;;  %s289_s17 = sld [smem:[#allocation4 + %s785_s9]]  ;;  %vm362_vm3 = vcmask 1040384   ;;  %vm364_vm4 = vcmask 1041408   ;;  %vm366_vm5 = vcmask 1042432  }
  0x8c   : > { %822 = vmatpush3.bf16.msra.mxu0 %v939_v2  ;;  %825 = vmatprep.mubr.msk.bf16.mxu0 %vm1164_vm1, %v1163_v3  ;;  %v377_v6 = vpack.c.bf16 %v1389_v5, %v1389_v5  ;;  %s293_s18 = sld [smem:[#allocation4 + %s292_s15]]  ;;  %s296_s24 = sadd.s32 2, %s785_s9  ;;  %vm368_vm6 = vcmask 1043456   ;;  %vm370_vm7 = vcmask 1044480   ;;  %vm372_vm8 = vcmask 1045504   ;;  %v941_v35 = vld [vmem:[#allocation10] sm:$0xff]  }
  0x8d   : > { %823 = vmatprep.subr.bf16.mxu0 %v1163_v3  ;;  %833 = vmatprep.mubr.msk.bf16.mxu1 %vm1164_vm1, %v1163_v3  ;;  %s297_s27 = sld [smem:[#allocation4 + %s296_s24]]  ;;  %s300_s23 = sadd.s32 3, %s785_s9  ;;  %vm374_vm9 = vcmask 1046528   ;;  %v942_v37 = vld [vmem:[#allocation10 + $0x8] sm:$0xff]   ;;  %v943_v45 = vld [vmem:[#allocation8 + $0x10] sm:$0xff]   ;;  %v944_v47 = vld [vmem:[#allocation8 + $0x18] sm:$0xff]  }
  0x8e   : > { %s301_s28 = sld [smem:[#allocation4 + %s300_s23]]  ;;  %s304_s2 = sadd.s32 4, %s785_s9  ;;  %830 = vmatpush3.bf16.msra.mxu1 %v941_v35  ;;  %v469_v48 = vld [vmem:[#allocation2 + $0x8] sm:$0xff]  ;;  %v797_v50 = vld [vmem:[%s1498_s4] ss:$0 sm:$0xff] }
  0x8f   : > { %s305_s26 = sld [smem:[#allocation4 + %s304_s2]]  ;;  %s308_s19 = sadd.s32 5, %s785_s9  ;;  %831 = vmatprep.subr.bf16.mxu1 %v1163_v3  ;;  %v540_v49 = vpack.c.bf16 %v469_v48, %v469_v48 }
  0x90   : > { %824 = vmatpush3.bf16.msra.mxu0 %v940_v4  ;;  %s309_s8 = sld [smem:[#allocation4 + %s308_s19]]  ;;  %s312_s25 = sadd.s32 6, %s785_s9 }
  0x91   : > { %s290_s29 = scalar_lea.vmem [#allocation5], %s289_s17  ;;  %s313_s1 = sld [smem:[#allocation4 + %s312_s25]] }
  0x92   : > { %v291_v7 = vld [vmem:[%s290_s29] sm:$0x1]  ;;  %s294_s30 = scalar_lea.vmem [#allocation5], %s293_s18  ;;  %s316_s15 = sadd.s32 7, %s785_s9  ;;  %832 = vmatpush3.bf16.msra.mxu1 %v942_v37 }
  0x93   : > { %826 = vmatmul.mubr.msk.bf16.vlgmr.msra.gmra.mrb[0].mxu0 %vm394_vm2, %v377_v6  ;;  %v786_v8 = vld [vmem:[%s294_s30] ss:$0 sm:$0xff]  ;;  %s298_s22 = scalar_lea.vmem [#allocation5], %s297_s27  ;;  %s317_s24 = sld [smem:[#allocation4 + %s316_s15]]  ;;  %837 = vmatprep.subr.bf16.mxu1 %v1163_v3 }
  0x94   : > { %v787_v9 = vld [vmem:[%s298_s22] ss:$0 sm:$0xff]  ;;  %v363_v10 = vsel %vm362_vm3, %v291_v7, %v786_v8  ;;  %s302_s3 = scalar_lea.vmem [#allocation5], %s301_s28  ;;  %s1167_s25 = smov 96  }
  0x95   : > { %v788_v11 = vld [vmem:[%s302_s3] ss:$0 sm:$0xff]  ;;  %v365_v12 = vsel %vm364_vm4, %v363_v10, %v787_v9  ;;  %s306_s23 = scalar_lea.vmem [#allocation5], %s305_s26  ;;  %s1165_s3 = smov 32  }
  0x96   : > { %v789_v13 = vld [vmem:[%s306_s23] ss:$0 sm:$0xff]  ;;  %v367_v14 = vsel %vm366_vm5, %v365_v12, %v788_v11  ;;  %s310_s17 = scalar_lea.vmem [#allocation5], %s309_s8  ;;  %s1529_s28 = scalar_lea.vmem [#allocation11], %s1374_s10 }
  0x97   : > { %v790_v15 = vld [vmem:[%s310_s17] ss:$0 sm:$0xff]  ;;  %v369_v16 = vsel %vm368_vm6, %v367_v14, %v789_v13  ;;  %s314_s18 = scalar_lea.vmem [#allocation5], %s313_s1  ;;  %s1166_s1 = smov 64  }
  0x98   : > { %v791_v17 = vld [vmem:[%s314_s18] ss:$0 sm:$0xff]  ;;  %v371_v18 = vsel %vm370_vm7, %v369_v16, %v790_v15  ;;  %p805_p13 = scmp.ne.s32.totalorder %s1245_s0, 7 }
  0x99   : > { %s318_s22 = scalar_lea.vmem [#allocation5], %s317_s24  ;;  %v373_v20 = vsel %vm372_vm8, %v371_v18, %v791_v17 }
  0x9a   : > { %v792_v19 = vld [vmem:[%s318_s22] ss:$0 sm:$0xff] }
  0x9b   : > { %v375_v21 = vsel %vm374_vm9, %v373_v20, %v792_v19 }
 0x166   : > { %v432_v22 = vpop.f32.mrb[0].mxu0 }
 0x167   : > { %v438_v23 = vadd.f32 %v432_v22, %v375_v21  ;;  %v827_v24 = vpop.f32.mrb[1].mxu0 }
 0x168   : > { %v435_v25 = vpop.f32.mrb[2].mxu0 }
 0x169   : > { %v828_v26 = vpop.f32.mrb[3].mxu0  ;;  %446 = vrot.lane.b32.xlu0 %v438_v23, %s1165_s3  ;;  %v796_v27 = vmul.f32 -1.442695, %v438_v23 }
 0x16b   : > { %945 = vpow2.f32 %v796_v27 }
 0x175   : > { %v946_v28 = vpop.eup %945 }
 0x176   : > { %v442_v29 = vadd.f32 1.0, %v946_v28 }
 0x178   : > { %947 = vrcp.f32 %v442_v29 }
 0x182   : > { %v948_v30 = vpop.eup %947 }
 0x183   : > { %v456_v39 = vsub.f32 1.0, %v948_v30 }
 0x1db   : > { %v447_v31 = vpop.permute.xlu0 %446 }
 0x1dc   : > { %v449_v32 = vmul.f32 %v948_v30, %v447_v31 }
 0x1de   : > { %451 = vrot.lane.b32.xlu0 %v449_v32, %s1166_s1 }
 0x250   : > { %v452_v33 = vpop.permute.xlu0 %451 }
 0x251   : > { %v454_v34 = vadd.f32 %v452_v33, %v438_v23 }
 0x253   : > { %949 = vtanh.f32 %v454_v34 }
 0x25d   : > { %v950_v36 = vpop.eup %949 }
 0x25e   : > { %458 = vrot.lane.b32.xlu1 %v950_v36, %s1167_s25 }
 0x262   : > { %463 = vrot.lane.b32.xlu1 %v1389_v5, %s1165_s3 }
 0x2d0   : > { %v459_v38 = vpop.permute.xlu1 %458 }
 0x2d1   : > { %v461_v41 = vmul.f32 %v459_v38, %v456_v39 }
 0x2d4   : > { %v464_v40 = vpop.permute.xlu1 %463 }
 0x2d5   : > { %v466_v42 = vmul.f32 %v948_v30, %v464_v40 }
 0x2d7   : > { %v467_v43 = vadd.f32 %v466_v42, %v461_v41 }
 0x2d9   : > { %v470_v44 = vpack.c.bf16 %v467_v43, %v467_v43 }
 0x2db   : > { %483 = vrot.lane.b32.xlu0 %v470_v44, %s1167_s25 }
 0x34d   : > { %v484_v46 = vpop.permute.xlu0 %483 }
 0x34e   : > { %834 = vmatmul.mubr.msk.bf16.vlgmr.msra.gmra.mrb[0].mxu1 %vm394_vm2, %v484_v46 }
 0x34f   : > { %838 = vmatpush3.bf16.msra.mxu1 %v943_v45  ;;  %841 = vmatprep.mubr.msk.bf16.mxu1 %vm1164_vm1, %v1163_v3 }
 0x350   : > { %839 = vmatprep.subr.bf16.mxu1 %v1163_v3 }
 0x353   : > { %840 = vmatpush3.bf16.msra.mxu1 %v944_v47 }
 0x35a   : > { %842 = vmatmul.mubr.msk.bf16.vlgmr.msra.gmra.mrb[0].mxu1 %vm394_vm2, %v540_v49 }
 0x42d   : > { %v595_v51 = vpop.f32.mrb[0].mxu1 }
 0x42e   : > { %v845_v52 = vadd.f32 %v797_v50, %v595_v51  ;;  %v843_v53 = vpop.f32.mrb[1].mxu1 }
 0x42f   : > { %v598_v54 = vpop.f32.mrb[2].mxu1 }
 0x430   : > { %609 = vrot.lane.b32.xlu1 %v845_v52, %s1165_s3  ;;  %v844_v55 = vpop.f32.mrb[3].mxu1  ;;  %v804_v56 = vmul.f32 -1.442695, %v845_v52 }
 0x432   : > { %951 = vpow2.f32 %v804_v56 }
 0x43c   : > { %v952_v57 = vpop.eup %951 }
 0x43d   : > { %v605_v58 = vadd.f32 1.0, %v952_v57 }
 0x43f   : > { %953 = vrcp.f32 %v605_v58 }
 0x449   : > { %v954_v59 = vpop.eup %953 }
 0x44a   : > { %v619_v2 = vsub.f32 1.0, %v954_v59 }
 0x4a2   : > { %v610_v60 = vpop.permute.xlu1 %609 }
 0x4a3   : > { %v612_v61 = vmul.f32 %v954_v59, %v610_v60 }
 0x4a5   : > { %614 = vrot.lane.b32.xlu0 %v612_v61, %s1166_s1 }
 0x4a9   : > { %626 = vrot.lane.b32.xlu0 %v469_v48, %s1165_s3 }
 0x517   : > { %v615_v62 = vpop.permute.xlu0 %614 }
 0x518   : > { %v617_v63 = vadd.f32 %v845_v52, %v615_v62 }
 0x51a   : > { %955 = vtanh.f32 %v617_v63 }
 0x51b   : > { %v627_v1 = vpop.permute.xlu0 %626 }
 0x51c   : > { %v629_v4 = vmul.f32 %v954_v59, %v627_v1 }
 0x524   : > { %v956_v0 = vpop.eup %955 }
 0x525   : > { %621 = vrot.lane.b32.xlu1 %v956_v0, %s1167_s25 }
 0x529   : > { %632 = vrot.lane.b32.xlu1 %v467_v43, %s1167_s25 }
 0x597   : > { %v622_v3 = vpop.permute.xlu1 %621 }
 0x598   : > { %v624_v5 = vmul.f32 %v622_v3, %v619_v2 }
 0x59a   : > { %v630_v6 = vadd.f32 %v629_v4, %v624_v5 }
 0x59b   : > { %v633_v7 = vpop.permute.xlu1 %632 }
 0x59c   : > { %635 = vst.msk [vmem:[#allocation2] sm:$0xff] %vm394_vm2, %v633_v7  ;;  %637 = vrot.lane.b32.xlu0 %v630_v6, %s1167_s25 }
 0x5a3   : > { %v646_v9 = vld [vmem:[#allocation2] sm:$0xff] (!%p805_p13) }
 0x5a4   : > { %648 = vst.msk [vmem:[#allocation12] sm:$0xff] (!%p805_p13), %vm394_vm2, %v646_v9 }
 0x609   : > { %645 = sbr.rel (%p805_p13) target bundleno = 1560 (0x618), region = 60 }
 0x60e   : > { %v638_v8 = vpop.permute.xlu0 %637 }
 0x60f   : > { %640 = vst.msk [vmem:[#allocation2 + $0x8] sm:$0xff] %vm394_vm2, %v638_v8  ;;  %641 = vst.msk [vmem:[%s1529_s28] sm:$0xff] %vm394_vm2, %v638_v8 }
 0x616   : > { %v647_v10 = vld [vmem:[#allocation2 + $0x8] sm:$0xff] }
 0x617   : > { %649 = vst.msk [vmem:[#allocation12 + $0x8] sm:$0xff] %vm394_vm2, %v647_v10 }
 0x618 PF: > { %s807_s2 = sshll.u32 %s1245_s0, 7  ;;  %s1530_s30 = scalar_lea.vmem [#allocation11], %s1374_s10 }
 0x619   : > { %s1432_s29 = scalar_lea.hbm %s1500_s6, %s807_s2  ;;  %s664_s8 = sshll.u32 %s1530_s30, 4  ;;  %s665_s8 = int_to_ptr.vmem [resolvable:$true] %s664_s8 }
 0x61a   : > { %s1531_s15 = sand.u32 1, %s1145_s12   ;;  %s1051_s23 = scalar_lea.vmem %s665_s8, 128 }
 0x61b   : > { %s651_s24 = scalar_lea.sflag [#allocation7], %s1531_s15  ;;  %p1052_p0 = scmp.ne.s32.totalorder %s665_s8, %s1051_s23 }
 0x61c   : > { %p1532_p3 = scmp.ne.s32.totalorder %s1513_s20, 0  ;;  %s1168_s17 = smov [#allocation11]  }
 0x61d   : > { %s1055_s18 = sshll.u32 %s1168_s17, 4  ;;  %s1056_s18 = int_to_ptr.vmem [resolvable:$false] %s1055_s18 }
 0x61e   : > { %p1053_p6 = pnand %p1052_p0, %p1532_p3  ;;  %s1057_s22 = scalar_lea.vmem %s1056_s18, 256 }
 0x61f   : > { %p1058_p10 = scmp.lt.s32.totalorder %s665_s8, %s1056_s18  ;;  %p1059_p11 = scmp.lt.s32.totalorder %s1057_s22, %s1051_s23 }
 0x620   : > { %p1054_p7 = pneg %p1053_p6 }
 0x621   : > { %p1060_p1 = por %p1059_p11, %p1058_p10 }
 0x623   : > { %p1061_p5 = pnand %p1060_p1, %p1054_p7 }
 0x625   : > { %1064 = shalt.err (!%p1061_p5)
}
 0x626   : > { %s1065_s10 = scalar_lea.hbm %s1432_s29, 128  ;;  %s1069_s25 = scalar_lea.hbm %s1500_s6, 1024 }
 0x627   : > { %p1066_p4 = scmp.ne.s32.totalorder %s1432_s29, %s1065_s10  ;;  %p1070_p12 = scmp.lt.u32.totalorder %s1432_s29, %s1500_s6 }
 0x628   : > { %p1071_p2 = scmp.lt.u32.totalorder %s1069_s25, %s1065_s10  ;;  %p1073_p0 = scmp.lt.u32.totalorder %s1065_s10, %s1432_s29 }
 0x629   : > { %p1067_p8 = pnand %p1066_p4, %p1532_p3 }
 0x62a   : > { %p1072_p13 = por %p1071_p2, %p1070_p12 }
 0x62b   : > { %p1068_p9 = pneg %p1067_p8 }
 0x62c   : > { %p1074_p6 = por %p1073_p0, %p1072_p13 }
 0x62e   : > { %p1075_p7 = pnand %p1074_p6, %p1068_p9 }
 0x630   : > { %1078 = shalt.err (!%p1075_p7)
}
 0x631   : > { %862 = dma.vmem_to_hbm [thread:$0]  (%p1532_p3), %s665_s8, 128, %s1432_s29, %s651_s24  }
 0x632   : > { %s1169_s28 = smov [#allocation12]   ;;  %p1533_p11 = scmp.eq.s32.totalorder %s1245_s0, 7 }
 0x633   : > { %s674_s2 = sshll.u32 %s1169_s28, 4  ;;  %s675_s2 = int_to_ptr.vmem [resolvable:$true] %s674_s2 }
 0x634   : > { %s1079_s26 = scalar_lea.vmem %s675_s2, 256  ;;  %p1086_p4 = scmp.lt.s32.totalorder %s675_s2, %s675_s2 }
 0x635   : > { %p1080_p10 = scmp.ne.s32.totalorder %s675_s2, %s1079_s26  ;;  %p1087_p8 = scmp.lt.s32.totalorder %s1079_s26, %s1079_s26 }
 0x637   : > { %p1081_p1 = pnand %p1080_p10, %p1533_p11  ;;  %p1088_p12 = por %p1087_p8, %p1086_p4 }
 0x639   : > { %p1082_p5 = pneg %p1081_p1 }
 0x63b   : > { %p1089_p2 = pnand %p1088_p12, %p1082_p5 }
 0x63d   : > { %1092 = shalt.err (!%p1089_p2)
}
 0x63e   : > { %s1093_s20 = scalar_lea.hbm %s1501_s7, 256  ;;  %p1534_p9 = pmov %p1533_p11 }
 0x63f   : > { %p1094_p3 = scmp.ne.s32.totalorder %s1501_s7, %s1093_s20  ;;  %p1099_p6 = scmp.lt.u32.totalorder %s1093_s20, %s1501_s7 }
 0x641   : > { %p1095_p13 = pnand %p1094_p3, %p1534_p9 }
 0x643   : > { %p1096_p0 = pneg %p1095_p13 }
 0x645   : > { %p1101_p7 = pnand %p1099_p6, %p1096_p0 }
 0x647   : > { %1104 = shalt.err (!%p1101_p7)
}
 0x648   : > { %s1170_s23 = smov 128   ;;  %s1171_s17 = smov 8  }
 0x649   : > { %p1535_p10 = pmov %p1534_p9  ;;  %p1536_p11 = pmov %p1534_p9 }
 0x64b   : > { %864 = dma.vmem_to_hbm [thread:$0]  (%p1535_p10), %s675_s2, 256, %s1501_s7, [#allocation13], %s1170_s23, %s1170_s23, %s1171_s17  }
 0x64c   : > { %1132 = dma.done.wait (%p1536_p11), [#allocation13], 256   ;;  %p1537_p1 = pmov %p1534_p9 }
 0x64e   : > { %1134 = vsyncadd (%p1537_p1), [#allocation13], 4294967040 }
 0x64f PF: > { %p890_p5 = scmp.ge.s32.totalorder %s1153_s14, 2  ;;  %s693_s10 = sand.u32 1, %s1141_s11  }
 0x650   : > { %p1538_p4 = scmp.ne.s32.totalorder %s1514_s21, 0  ;;  %s694_s3 = scalar_lea.sflag [#allocation7], %s693_s10 }
 0x652   : > { %p879_p8 = pnand %p890_p5, %p1538_p4 }
 0x654   : > { %1136 = dma.done.wait (!%p879_p8), %s694_s3, 128  }
 0x655   : > { %1138 = vsyncadd (!%p879_p8), %s694_s3, 4294967168  ;;  %s1539_s1 = sld [smem:[#allocation19_spill]]  ;;  %p25_p12 = scmp.ge.s32.totalorder %s1249_s16, 10  }
 0x656   : > { %s1540_s11 = smov %s1145_s12  ;;  %s1541_s12 = smov %s1149_s13 }
 0x657   : > { %s1543_s14 = smov %s1249_s16  ;;  %27 = sbr.rel (!%p25_p12) target bundleno = 19 (0x13), region = 111 }
 0x65b   : > { %s1542_s13 = smov %s1539_s1 }
 0x65e   :  { %699 = vsyncpa [#allocation6], 1 }
 0x65f   :  { %701 = vsyncpa [#allocation6 + $0x1], 1 }
 0x660   :  { %702 = vsyncpa [#allocation9], 1 }
 0x661   :  { %703 = vsyncpa [#allocation7], 1 }
 0x662   :  { %705 = vsyncpa [#allocation7 + $0x1], 1 }
 0x663   :  { %706 = vsyncpa [#allocation13], 1 }

</bundles_post_ra>
